<compile_context>
chip_gen: v7x
topology: tpu7x:2x2x1
jax: 0.10.0
libtpu: 0.0.40
codegen_flags: <defaults>
</compile_context>

<pallas_src>
import functools

import jax
import jax.numpy as jnp
from jax.experimental import pallas as pl
from jax.experimental.pallas import tpu as pltpu


def _sum_kernel(x_ref, o_ref, acc_ref, *, tile_rows, valid_rows, steps_per_core):
    """Accumulate a per-core (8, 128) partial sum of the (rows, 128) slab."""
    p = pl.program_id(0)   # core-parallel axis (v7x: one per TensorCore)
    k = pl.program_id(1)   # streaming reduction axis

    @pl.when(k == 0)
    def _():
        acc_ref[...] = jnp.zeros_like(acc_ref)

    # Logical (unclamped) row-tile index -> global starting row of this tile.
    row0 = (p * steps_per_core + k) * tile_rows

    tile = x_ref[...].astype(jnp.float32)                  # (tile_rows, 128)
    row_ids = row0 + jax.lax.broadcasted_iota(jnp.int32, tile.shape, 0)
    tile = jnp.where(row_ids < valid_rows, tile, 0.0)      # mask ragged/OOB rows

    # Fold into the vreg-shaped accumulator: pure VPU adds across vregs,
    # no cross-lane XLU reduce in the steady state.
    acc_ref[...] += jnp.sum(tile.reshape(tile_rows // 8, 8, 128), axis=0)

    @pl.when(k == pl.num_programs(1) - 1)
    def _():
        o_ref[...] = acc_ref[...]


def _pallas_partial_sums(x2d, tile_rows, num_cores):
    """Returns a (num_cores * 8, 128) f32 array of partial sums of x2d."""
    rows, lanes = x2d.shape
    assert lanes == 128
    nblocks = pl.cdiv(rows, tile_rows)
    num_cores = max(1, min(num_cores, nblocks))
    steps_per_core = pl.cdiv(nblocks, num_cores)
    last_block = nblocks - 1

    def x_index_map(p, k):
        # Clamp so a core whose logical tile runs past the array still issues
        # a legal DMA; the in-kernel row mask zeroes any duplicated data.
        return (jnp.minimum(p * steps_per_core + k, last_block), 0)

    kernel = functools.partial(
        _sum_kernel,
        tile_rows=tile_rows,
        valid_rows=rows,
        steps_per_core=steps_per_core,
    )

    itemsize = jnp.dtype(x2d.dtype).itemsize
    cost = pl.CostEstimate(
        flops=rows * lanes,
        transcendentals=0,
        bytes_accessed=rows * lanes * itemsize + num_cores * 8 * 128 * 4,
    )

    return pl.pallas_call(
        kernel,
        out_shape=jax.ShapeDtypeStruct((num_cores * 8, 128), jnp.float32),
        grid_spec=pltpu.PrefetchScalarGridSpec(
            num_scalar_prefetch=0,
            grid=(num_cores, steps_per_core),
            in_specs=[pl.BlockSpec((tile_rows, 128), x_index_map)],
            out_specs=pl.BlockSpec((8, 128), lambda p, k: (p, 0)),
            scratch_shapes=[pltpu.VMEM((8, 128), jnp.float32)],
        ),
        compiler_params=pltpu.CompilerParams(
            dimension_semantics=("parallel", "arbitrary"),
        ),
        cost_estimate=cost,
    )(x2d)


def content_loss(x, label=None, *, tile_rows=None, num_cores=2,
                 min_elements_for_pallas=32768):
    """Equivalent of ContentLoss.forward: returns x.mean() (label is unused)."""
    del label  # unused, matches the PyTorch module

    total = x.size
    out_dtype = x.dtype if jnp.issubdtype(x.dtype, jnp.floating) else jnp.float32

    lanes = 128
    itemsize = jnp.dtype(x.dtype).itemsize
    row_align = 8 * max(1, 4 // itemsize)   # 8 (f32), 16 (bf16), 32 (int8)

    flat = x.reshape(-1)                    # free metadata reshape, no copy
    main = (total // lanes) * lanes
    rows = main // lanes

    # Tiny / degenerate inputs: a plain XLA reduce beats kernel-launch + grid
    # overhead and moves no extra bytes.
    if total < min_elements_for_pallas or rows < row_align:
        return jnp.mean(x.astype(jnp.float32)).astype(out_dtype)

    # Lane-dense (rows, 128) slab with no padding copy.
    if main == total:
        x2d = flat.reshape(rows, lanes)
    else:
        x2d = flat[:main].reshape(rows, lanes)

    # Row tile: as big as practical (default 2048 rows -> 1 MiB f32 tile; the
    # double-buffered working set stays far below v7x's 64 MiB VMEM), clipped
    # to the array and kept a multiple of the dtype's sublane pack.
    if tile_rows is None:
        tile_rows = 2048
    tile_rows = min(tile_rows, rows)
    tile_rows = max(row_align, (tile_rows // row_align) * row_align)

    partials = _pallas_partial_sums(x2d, tile_rows, num_cores)
    total_sum = jnp.sum(partials)           # tiny (<= 8 KiB) epilogue reduce

    if main != total:
        # <128-element ragged tail: negligible, summed in plain JAX.
        total_sum = total_sum + jnp.sum(flat[main:].astype(jnp.float32))

    return (total_sum / total).astype(out_dtype)


def _check(x, ref_fn=jnp.mean, **kwargs):
    loss = content_loss(x, None, **kwargs)
    jax.block_until_ready(loss)
    ref = ref_fn(x)
    assert jnp.allclose(loss, ref, atol=1e-6, rtol=1e-5), (kwargs, loss, ref)
    return loss


if __name__ == "__main__":
    key = jax.random.PRNGKey(0)
    ks = jax.random.split(key, 8)

    # Required small NCHW test case (kernel path forced).
    x = jax.random.normal(ks[0], (2, 4, 16, 16), dtype=jnp.float32)
    label = jax.random.normal(ks[1], (2, 4, 16, 16), dtype=jnp.float32)  # unused
    loss = content_loss(x, label, min_elements_for_pallas=0)
    jax.block_until_ready(loss)
    assert jnp.allclose(loss, jnp.mean(x), atol=1e-6, rtol=1e-5), (loss, jnp.mean(x))

    # Multi-tile grid + 2-way "parallel" core axis.
    _check(jax.random.normal(ks[2], (2, 8, 32, 32), dtype=jnp.float32),
           tile_rows=32, min_elements_for_pallas=0)
    # Ragged last row-tile (rows not a multiple of tile_rows) -> in-kernel mask.
    _check(jax.random.normal(ks[3], (2, 3, 16, 16), dtype=jnp.float32),
           min_elements_for_pallas=0)
    # Odd block count: second parallel index hits a clamped, fully-masked tile.
    _check(jax.random.normal(ks[4], (3, 4, 16, 16), dtype=jnp.float32),
           min_elements_for_pallas=0)
    # Element count not a multiple of 128: <128-element tail summed in JAX.
    _check(jax.random.normal(ks[5], (2, 4, 15, 17), dtype=jnp.float32),
           min_elements_for_pallas=0)
    # Default configuration (large tile, short-circuit threshold exceeded).
    _check(jax.random.normal(ks[6], (2, 16, 64, 64), dtype=jnp.float32))

    print("KERNEL_OK")
</pallas_src>

<mosaic_0001>
module attributes {stable_mosaic.version = 11 : i64} {
  func.func @_sum_kernel(%arg0: i32, %arg1: i32, %arg2: memref<16x128xf32, #tpu.memory_space<vmem>>, %arg3: memref<8x128xf32, #tpu.memory_space<vmem>>, %arg4: memref<8x128xf32, #tpu.memory_space<vmem>>) attributes {dimension_semantics = [#tpu.dimension_semantics<parallel>, #tpu.dimension_semantics<arbitrary>], iteration_bounds = array<i64: 1, 1>, scalar_prefetch = 0 : i64, scratch_operands = 1 : i64, tpu.core_type = #tpu.core_type<tc>, window_params = [{transform_indices = @transform_0, window_bounds = array<i64: 16, 128>}, {transform_indices = @transform_1, window_bounds = array<i64: 8, 128>}]} {
    %c0_i32 = arith.constant 0 : i32
    %0 = arith.cmpi eq, %arg1, %c0_i32 : i32
    %1 = arith.extui %0 : i1 to i32
    %c0_i32_0 = arith.constant 0 : i32
    %2 = arith.cmpi ne, %1, %c0_i32_0 : i32
    scf.if %2 {
      %cst_10 = arith.constant 0.000000e+00 : f32
      %22 = vector.broadcast %cst_10 : f32 to vector<8x128xf32>
      %c0_11 = arith.constant 0 : index
      %c0_12 = arith.constant 0 : index
      %23 = vector.load %arg4[%c0_11, %c0_12] : memref<8x128xf32, #tpu.memory_space<vmem>>, vector<8x128xf32>
      tpu.vector_store %arg4[%c0_11, %c0_12], %22 {strides = array<i32>} : memref<8x128xf32, #tpu.memory_space<vmem>>, vector<8x128xf32>,
    } else {
    }
    %c1_i32 = arith.constant 1 : i32
    %3 = arith.muli %arg0, %c1_i32 : i32
    %4 = arith.addi %3, %arg1 : i32
    %c16_i32 = arith.constant 16 : i32
    %5 = arith.muli %4, %c16_i32 : i32
    %c0 = arith.constant 0 : index
    %c0_1 = arith.constant 0 : index
    %6 = vector.load %arg2[%c0, %c0_1] : memref<16x128xf32, #tpu.memory_space<vmem>>, vector<16x128xf32>
    %7 = tpu.iota {dimensions = array<i32: 0>} : vector<16x128xi32>
    %8 = vector.broadcast %5 : i32 to vector<16x128xi32>
    %9 = arith.addi %8, %7 : vector<16x128xi32>
    %c16_i32_2 = arith.constant 16 : i32
    %10 = vector.broadcast %c16_i32_2 : i32 to vector<16x128xi32>
    %11 = arith.cmpi slt, %9, %10 : vector<16x128xi32>
    %cst = arith.constant 0.000000e+00 : f32
    %12 = vector.broadcast %cst : f32 to vector<16x128xf32>
    %13 = arith.select %11, %6, %12 : vector<16x128xi1>, vector<16x128xf32>
    %c0_3 = arith.constant 0 : index
    %c0_4 = arith.constant 0 : index
    %14 = vector.load %arg4[%c0_3, %c0_4] : memref<8x128xf32, #tpu.memory_space<vmem>>, vector<8x128xf32>
    %15 = vector.shape_cast %13 : vector<16x128xf32> to vector<2x8x128xf32>
    %cst_5 = arith.constant dense<0.000000e+00> : vector<8x128xf32>
    %16 = vector.multi_reduction <add>, %15, %cst_5 [0] : vector<2x8x128xf32> to vector<8x128xf32>
    %17 = arith.addf %14, %16 : vector<8x128xf32>
    %c0_6 = arith.constant 0 : index
    %c0_7 = arith.constant 0 : index
    %18 = vector.load %arg4[%c0_6, %c0_7] : memref<8x128xf32, #tpu.memory_space<vmem>>, vector<8x128xf32>
    tpu.vector_store %arg4[%c0_6, %c0_7], %17 {strides = array<i32>} : memref<8x128xf32, #tpu.memory_space<vmem>>, vector<8x128xf32>,
    %c0_i32_8 = arith.constant 0 : i32
    %19 = arith.cmpi eq, %arg1, %c0_i32_8 : i32
    %20 = arith.extui %19 : i1 to i32
    %c0_i32_9 = arith.constant 0 : i32
    %21 = arith.cmpi ne, %20, %c0_i32_9 : i32
    scf.if %21 {
      %c0_10 = arith.constant 0 : index
      %c0_11 = arith.constant 0 : index
      %22 = vector.load %arg4[%c0_10, %c0_11] : memref<8x128xf32, #tpu.memory_space<vmem>>, vector<8x128xf32>
      %c0_12 = arith.constant 0 : index
      %c0_13 = arith.constant 0 : index
      %23 = vector.load %arg3[%c0_12, %c0_13] : memref<8x128xf32, #tpu.memory_space<vmem>>, vector<8x128xf32>
      tpu.vector_store %arg3[%c0_12, %c0_13], %22 {strides = array<i32>} : memref<8x128xf32, #tpu.memory_space<vmem>>, vector<8x128xf32>,
    } else {
    }
    return
  }
  func.func @transform_0(%arg0: i32, %arg1: i32) -> (i32, i32) {
    %c1_i32 = arith.constant 1 : i32
    %0 = arith.muli %arg0, %c1_i32 : i32
    %1 = arith.addi %0, %arg1 : i32
    %c0_i32 = arith.constant 0 : i32
    %2 = arith.minsi %1, %c0_i32 : i32
    %c0_i32_0 = arith.constant 0 : i32
    %c0_i32_1 = arith.constant 0 : i32
    return %2, %c0_i32_0 : i32, i32
  }
  func.func @transform_1(%arg0: i32, %arg1: i32) -> (i32, i32) {
    %c0_i32 = arith.constant 0 : i32
    %c0_i32_0 = arith.constant 0 : i32
    return %arg0, %c0_i32 : i32, i32
  }
}

</mosaic_0001>

<bundles_post_ra>
// kernel: tpu_custom_call.1
= control target key start
LH: loop header
LB: loop body
LE: loop exit
PB: predicated region body
PF: predicated region fallthrough
CT: control target
= control target key end

     0   :  { %6 = vsyncpa [#allocation4], 0  ;;  %s168_s0 = inlined_call_operand.hbm [shape: f32[16,128], index: 0, kind: input, shape index: {}]   ;;  %s169_s1 = inlined_call_operand.hbm [shape: f32[8,128], index: 1, kind: output, shape index: {}]  }
   0x1   :  { %7 = vsyncpa [#allocation5], 0  ;;  %s130_s6 = smov [#allocation3]   ;;  %s82_s10 = scalar_lea.hbm %s168_s0, 256 }
   0x2   :  { %s19_s7 = sshll.u32 %s130_s6, 4  ;;  %p83_p0 = scmp.ne.s32.totalorder %s168_s0, %s82_s10  ;;  %s20_s7 = int_to_ptr.vmem [resolvable:$true] %s19_s7 }
   0x3   :  { %p86_p1 = scmp.lt.u32.totalorder %s82_s10, %s168_s0 }
   0x5   :  { %p88_p2 = pnand %p86_p1, %p83_p0 }
   0x7   :  { %91 = shalt.err (!%p88_p2)
}
   0x8   :  { %s92_s15 = scalar_lea.vmem %s20_s7, 256  ;;  %p97_p4 = scmp.lt.s32.totalorder %s20_s7, %s20_s7 }
   0x9   :  { %p93_p3 = scmp.ne.s32.totalorder %s20_s7, %s92_s15  ;;  %p98_p5 = scmp.lt.s32.totalorder %s92_s15, %s92_s15 }
   0xb   :  { %p99_p6 = por %p98_p5, %p97_p4 }
   0xd   :  { %p100_p7 = pnand %p99_p6, %p93_p3 }
   0xf   :  { %103 = shalt.err (!%p100_p7)
}
  0x10   :  { %s131_s16 = smov 128   ;;  %s132_s17 = smov 8  }
  0x11   :  { %25 = dma.hbm_to_vmem [thread:$0]  %s168_s0, 256, %s20_s7, [#allocation4], %s131_s16, %s131_s16, %s132_s17  }
  0x12   :  { %126 = dma.done.wait [#allocation4], 256  }
  0x13   :  { %127 = vsyncadd [#allocation4], 4294967040  ;;  %s133_s20 = smov [#allocation6]   ;;  %v40_v0 = vld [vmem:[#allocation3] sm:$0xff]  ;;  %v41_v1 = vld [vmem:[#allocation3 + $0x8] sm:$0xff] }
  0x14   :  { %s67_s21 = sshll.u32 %s133_s20, 4  ;;  %v53_v2 = vadd.f32 %v41_v1, %v40_v0  ;;  %s68_s21 = int_to_ptr.vmem [resolvable:$true] %s67_s21 }
  0x15   :  { %s104_s22 = scalar_lea.vmem %s68_s21, 128  ;;  %p109_p9 = scmp.lt.s32.totalorder %s68_s21, %s68_s21 }
  0x16   :  { %60 = vst [vmem:[#allocation6] sm:$0xff] %v53_v2  ;;  %p105_p8 = scmp.ne.s32.totalorder %s68_s21, %s104_s22  ;;  %p110_p10 = scmp.lt.s32.totalorder %s104_s22, %s104_s22 }
  0x18   :  { %p111_p11 = por %p110_p10, %p109_p9 }
  0x1a   :  { %p112_p12 = pnand %p111_p11, %p105_p8 }
  0x1c   :  { %115 = shalt.err (!%p112_p12)
}
  0x1d   :  { %s116_s0 = scalar_lea.hbm %s169_s1, 128 }
  0x1e   :  { %p117_p13 = scmp.ne.s32.totalorder %s169_s1, %s116_s0  ;;  %p120_p0 = scmp.lt.u32.totalorder %s116_s0, %s169_s1 }
  0x20   :  { %p122_p1 = pnand %p120_p0, %p117_p13 }
  0x22   :  { %125 = shalt.err (!%p122_p1)
}
  0x23   :  { %70 = dma.vmem_to_hbm [thread:$0]  %s68_s21, 128, %s169_s1, [#allocation5]  }
  0x24   :  { %128 = dma.done.wait [#allocation5], 128  }
  0x25   :  { %129 = vsyncadd [#allocation5], 4294967168 }
  0x26   :  { %74 = vsyncpa [#allocation4], 1 }
  0x27   :  { %75 = vsyncpa [#allocation5], 1 }

</bundles_post_ra>
